<compile_context>
chip_gen: v5e
topology: v5e:2x2
jax: 0.10.0
libtpu: 0.0.40
codegen_flags: <defaults>
</compile_context>

<pallas_src>
import jax
import jax.numpy as jnp
from jax.experimental import pallas as pl
from jax.experimental.pallas import tpu as pltpu


def _rup(x, m):
    return ((x + m - 1) // m) * m


def _make_kernel(input_shape, H, in_pad, h_pad, n_actions):
    """Build the kernel with static slab offsets baked in."""
    H3 = 3 * H
    r_w1 = 0
    r_wi = in_pad
    r_wh = in_pad + h_pad
    r_w2 = in_pad + 2 * h_pad

    def kernel(x_ref, h_ref, w_ref, b_ref, q_ref, hout_ref):
        cdt = w_ref.dtype                       # matmul-operand dtype (f32 or bf16)
        x = x_ref[...]                          # [bt, input_shape], cdt
        h_md = h_ref[...]                       # [bt, H], cdt (MXU operand)
        h_in = h_md.astype(jnp.float32)         # GRU elementwise math stays f32

        # fc1 + ReLU (MXU matmul + VPU max), f32 accumulate.
        w1 = w_ref[r_w1:r_w1 + input_shape, 0:H]
        b1 = b_ref[0:1, 0:H]
        xh32 = jnp.maximum(
            jnp.dot(x, w1, preferred_element_type=jnp.float32) + b1, 0.0)
        xh = xh32.astype(cdt)

        # GRUCell, PyTorch gate order (r, z, n), fused into 2 matmuls.
        wi = w_ref[r_wi:r_wi + H, 0:H3]
        wh = w_ref[r_wh:r_wh + H, 0:H3]
        bi = b_ref[1:2, 0:H3]
        bh = b_ref[2:3, 0:H3]
        gi = jnp.dot(xh, wi, preferred_element_type=jnp.float32) + bi
        gh = jnp.dot(h_md, wh, preferred_element_type=jnp.float32) + bh

        r = jax.nn.sigmoid(gi[:, 0:H] + gh[:, 0:H])
        z = jax.nn.sigmoid(gi[:, H:2 * H] + gh[:, H:2 * H])
        n = jnp.tanh(gi[:, 2 * H:3 * H] + r * gh[:, 2 * H:3 * H])
        h = (1.0 - z) * n + z * h_in            # f32

        # fc2 -> compact Q.  Masked vst for the narrow last dim, but saves
        # 16x of HBM writeback vs a 128-lane padded q and removes the wrapper slice.
        w2 = w_ref[r_w2:r_w2 + H, 0:n_actions]
        b2 = b_ref[3:4, 0:n_actions]
        q = jnp.dot(h.astype(cdt), w2, preferred_element_type=jnp.float32) + b2

        q_ref[...] = q.astype(q_ref.dtype)
        hout_ref[...] = h.astype(hout_ref.dtype)

    return kernel


def pack_params(params, input_shape, rnn_hidden_dim, n_actions, dtype=jnp.float32):
    """Pack weights into one slab (dtype) and biases into another (f32), lane-128 padded."""
    H = rnn_hidden_dim
    H3 = 3 * H
    in_pad = _rup(input_shape, 8)
    h_pad = _rup(H, 8)
    lanes = max(128, _rup(H3, 128), _rup(H, 128), _rup(n_actions, 128))
    rows = in_pad + 3 * h_pad

    w_i = jnp.concatenate([params["w_ir"], params["w_iz"], params["w_in"]], axis=1)
    w_h = jnp.concatenate([params["w_hr"], params["w_hz"], params["w_hn"]], axis=1)
    b_i = jnp.concatenate([params["b_ir"], params["b_iz"], params["b_in"]], axis=1)
    b_h = jnp.concatenate([params["b_hr"], params["b_hz"], params["b_hn"]], axis=1)

    w_slab = jnp.zeros((rows, lanes), jnp.float32)
    w_slab = w_slab.at[0:input_shape, 0:H].set(params["w1"])
    w_slab = w_slab.at[in_pad:in_pad + H, 0:H3].set(w_i)
    w_slab = w_slab.at[in_pad + h_pad:in_pad + h_pad + H, 0:H3].set(w_h)
    w_slab = w_slab.at[in_pad + 2 * h_pad:in_pad + 2 * h_pad + H,
                       0:n_actions].set(params["w2"])
    w_slab = w_slab.astype(dtype)

    b_slab = jnp.zeros((8, lanes), jnp.float32)   # biases stay f32 (exact adds)
    b_slab = b_slab.at[0:1, 0:H].set(params["b1"])
    b_slab = b_slab.at[1:2, 0:H3].set(b_i)
    b_slab = b_slab.at[2:3, 0:H3].set(b_h)
    b_slab = b_slab.at[3:4, 0:n_actions].set(params["b2"])

    meta = dict(input_shape=input_shape, H=H, n_actions=n_actions,
                in_pad=in_pad, h_pad=h_pad, lanes=lanes, rows=rows)
    return w_slab, b_slab, meta


def _pick_bt(B):
    """Batch tile: single block up to 512 rows; otherwise >=2 grid steps of
    <=2048 rows (shards the 'parallel' axis across v7x's two TensorCores,
    amortizes ~0.35us/step overhead, keeps per-block VMEM small everywhere)."""
    if B <= 512:
        return B
    return min(2048, _rup((B + 1) // 2, 8))


def rnn_agent_forward(inputs, hidden_state, w_slab, b_slab, meta, *, bt=None):
    """inputs: [B, input_shape], hidden_state: [..., H] -> (q [B, n_actions], h [B, H])."""
    input_shape = meta["input_shape"]
    H = meta["H"]
    n_actions = meta["n_actions"]
    lanes = meta["lanes"]
    rows = meta["rows"]
    cdt = w_slab.dtype

    B = inputs.shape[0]
    x = inputs.astype(cdt)
    h_in = hidden_state.reshape(-1, H).astype(cdt)

    if bt is None:
        bt = _pick_bt(B)
    Bp = _rup(B, bt)
    if Bp != B:  # pad batch so bt divides exactly; padded rows are sliced off below
        x = jnp.pad(x, ((0, Bp - B), (0, 0)))
        h_in = jnp.pad(h_in, ((0, Bp - B), (0, 0)))
    grid = (Bp // bt,)

    kernel = _make_kernel(input_shape, H, meta["in_pad"], meta["h_pad"], n_actions)

    itemsize = jnp.dtype(cdt).itemsize
    cost = pl.CostEstimate(
        flops=2 * Bp * (input_shape * H + 2 * H * 3 * H + H * n_actions),
        transcendentals=3 * Bp * H,
        bytes_accessed=(Bp * (input_shape + 2 * H + n_actions) * itemsize
                        + w_slab.size * itemsize + b_slab.size * 4),
    )

    q, h = pl.pallas_call(
        kernel,
        out_shape=(
            jax.ShapeDtypeStruct((Bp, n_actions), cdt),
            jax.ShapeDtypeStruct((Bp, H), cdt),
        ),
        grid=grid,
        in_specs=[
            pl.BlockSpec((bt, input_shape), lambda i: (i, 0)),
            pl.BlockSpec((bt, H), lambda i: (i, 0)),
            pl.BlockSpec((rows, lanes), lambda i: (0, 0)),   # weight slab, resident
            pl.BlockSpec((8, lanes), lambda i: (0, 0)),      # bias slab, resident
        ],
        out_specs=(
            pl.BlockSpec((bt, n_actions), lambda i: (i, 0)),
            pl.BlockSpec((bt, H), lambda i: (i, 0)),
        ),
        input_output_aliases={1: 1},   # h_in -> h_out: no extra BxH HBM allocation
        compiler_params=pltpu.CompilerParams(
            dimension_semantics=("parallel",)),
        cost_estimate=cost,
    )(x, h_in, w_slab, b_slab)

    if Bp != B:
        q = q[:B]
        h = h[:B]
    return q, h


def init_params(key, input_shape, rnn_hidden_dim, n_actions):
    """Deterministic parameter init (PyTorch-style uniform bounds)."""
    ks = jax.random.split(key, 18)
    H = rnn_hidden_dim

    def u(k, shape, fan_in):
        bound = 1.0 / jnp.sqrt(fan_in)
        return jax.random.uniform(k, shape, jnp.float32, -bound, bound)

    params = {
        # fc1: Linear(input_shape, H)  -> stored transposed [in, out]
        "w1": u(ks[0], (input_shape, H), input_shape),
        "b1": u(ks[1], (1, H), input_shape),
        # GRUCell(H, H): gate blocks stored transposed [H, H], order r, z, n.
        "w_ir": u(ks[2], (H, H), H), "w_iz": u(ks[3], (H, H), H), "w_in": u(ks[4], (H, H), H),
        "w_hr": u(ks[5], (H, H), H), "w_hz": u(ks[6], (H, H), H), "w_hn": u(ks[7], (H, H), H),
        "b_ir": u(ks[8], (1, H), H), "b_iz": u(ks[9], (1, H), H), "b_in": u(ks[10], (1, H), H),
        "b_hr": u(ks[11], (1, H), H), "b_hz": u(ks[12], (1, H), H), "b_hn": u(ks[13], (1, H), H),
        # fc2: Linear(H, n_actions) -> transposed [H, n_actions]
        "w2": u(ks[14], (H, n_actions), H),
        "b2": u(ks[15], (1, n_actions), H),
    }
    return params


def reference_forward(inputs, hidden_state, params, rnn_hidden_dim):
    """Pure-JAX reference (PyTorch GRUCell semantics) for a sanity check."""
    h_in = hidden_state.reshape(-1, rnn_hidden_dim)
    x = jnp.maximum(inputs @ params["w1"] + params["b1"], 0.0)
    r = jax.nn.sigmoid(x @ params["w_ir"] + params["b_ir"] + h_in @ params["w_hr"] + params["b_hr"])
    z = jax.nn.sigmoid(x @ params["w_iz"] + params["b_iz"] + h_in @ params["w_hz"] + params["b_hz"])
    n = jnp.tanh(x @ params["w_in"] + params["b_in"] + r * (h_in @ params["w_hn"] + params["b_hn"]))
    h = (1.0 - z) * n + z * h_in
    q = h @ params["w2"] + params["b2"]
    return q, h


if __name__ == "__main__":
    input_shape = 32      # obs + id one-hot + last-action one-hot
    rnn_hidden_dim = 32
    n_actions = 8

    key = jax.random.PRNGKey(0)
    k_params, k_x, k_h, k_x2, k_h2 = jax.random.split(key, 5)
    params = init_params(k_params, input_shape, rnn_hidden_dim, n_actions)

    # --- Test 1: f32 path, small batch, single block (tight tolerance). ---
    B = 8
    inputs = jax.random.normal(k_x, (B, input_shape), jnp.float32)
    hidden_state = jax.random.normal(k_h, (B, rnn_hidden_dim), jnp.float32)

    w32, b32, meta = pack_params(params, input_shape, rnn_hidden_dim, n_actions,
                                 dtype=jnp.float32)
    q, h = rnn_agent_forward(inputs, hidden_state, w32, b32, meta)
    q = jax.block_until_ready(q)
    h = jax.block_until_ready(h)

    q_ref, h_ref = reference_forward(inputs, hidden_state, params, rnn_hidden_dim)
    assert q.shape == (B, n_actions) and h.shape == (B, rnn_hidden_dim)
    assert jnp.allclose(q, q_ref, atol=1e-5), "q mismatch vs reference (f32)"
    assert jnp.allclose(h, h_ref, atol=1e-5), "h mismatch vs reference (f32)"

    # --- Test 2: multi-block grid + batch padding + aliased h (forced bt=8). ---
    B2 = 20   # not a multiple of bt -> exercises the pad-and-slice path
    inputs2 = jax.random.normal(k_x2, (B2, input_shape), jnp.float32)
    hidden2 = jax.random.normal(k_h2, (B2, rnn_hidden_dim), jnp.float32)
    q2, h2 = rnn_agent_forward(inputs2, hidden2, w32, b32, meta, bt=8)
    q2 = jax.block_until_ready(q2)
    h2 = jax.block_until_ready(h2)
    q2_ref, h2_ref = reference_forward(inputs2, hidden2, params, rnn_hidden_dim)
    assert jnp.allclose(q2, q2_ref, atol=1e-5), "q mismatch vs reference (multi-block)"
    assert jnp.allclose(h2, h2_ref, atol=1e-5), "h mismatch vs reference (multi-block)"

    # --- Test 3: bf16 matmul operands (v6e/v7x production path), loose tolerance. ---
    wbf, bbf, meta_bf = pack_params(params, input_shape, rnn_hidden_dim, n_actions,
                                    dtype=jnp.bfloat16)
    qb, hb = rnn_agent_forward(inputs, hidden_state, wbf, bbf, meta_bf)
    qb = jax.block_until_ready(qb).astype(jnp.float32)
    hb = jax.block_until_ready(hb).astype(jnp.float32)
    assert jnp.allclose(qb, q_ref, atol=5e-2, rtol=5e-2), "q mismatch vs reference (bf16)"
    assert jnp.allclose(hb, h_ref, atol=5e-2, rtol=5e-2), "h mismatch vs reference (bf16)"

    print("KERNEL_OK")
</pallas_src>

<mosaic_0001>
module attributes {stable_mosaic.version = 11 : i64} {
  func.func @kernel(%arg0: i32, %arg1: memref<8x32xf32, #tpu.memory_space<vmem>>, %arg2: memref<8x32xf32, #tpu.memory_space<vmem>>, %arg3: memref<128x128xf32, #tpu.memory_space<vmem>>, %arg4: memref<8x128xf32, #tpu.memory_space<vmem>>, %arg5: memref<8x8xf32, #tpu.memory_space<vmem>>, %arg6: memref<8x32xf32, #tpu.memory_space<vmem>>) attributes {dimension_semantics = [#tpu.dimension_semantics<parallel>], iteration_bounds = array<i64: 1>, scalar_prefetch = 0 : i64, scratch_operands = 0 : i64, tpu.core_type = #tpu.core_type<tc>, window_params = [{transform_indices = @transform_0, window_bounds = array<i64: 8, 32>}, {transform_indices = @transform_1, window_bounds = array<i64: 8, 32>}, {pipeline_mode = #tpu.pipeline_mode<synchronous>, transform_indices = @transform_2, window_bounds = array<i64: 128, 128>}, {pipeline_mode = #tpu.pipeline_mode<synchronous>, transform_indices = @transform_3, window_bounds = array<i64: 8, 128>}, {transform_indices = @transform_4, window_bounds = array<i64: 8, 8>}, {transform_indices = @transform_5, window_bounds = array<i64: 8, 32>}]} {
    %c0 = arith.constant 0 : index
    %c0_0 = arith.constant 0 : index
    %0 = vector.load %arg1[%c0, %c0_0] : memref<8x32xf32, #tpu.memory_space<vmem>>, vector<8x32xf32>
    %c0_1 = arith.constant 0 : index
    %c0_2 = arith.constant 0 : index
    %1 = vector.load %arg2[%c0_1, %c0_2] : memref<8x32xf32, #tpu.memory_space<vmem>>, vector<8x32xf32>
    %c0_3 = arith.constant 0 : index
    %c0_4 = arith.constant 0 : index
    %2 = vector.load %arg3[%c0_3, %c0_4] : memref<128x128xf32, #tpu.memory_space<vmem>>, vector<32x32xf32>
    %c0_5 = arith.constant 0 : index
    %c0_6 = arith.constant 0 : index
    %3 = vector.load %arg4[%c0_5, %c0_6] : memref<8x128xf32, #tpu.memory_space<vmem>>, vector<1x32xf32>
    %cst = arith.constant dense<0.000000e+00> : vector<8x32xf32>
    %4 = tpu.matmul %0, %2, %cst {dimension_numbers = #tpu.dot_dimension_numbers<[1], [0], [0], [1], [0, 0, 1, 1], [], []>} : vector<8x32xf32>, vector<32x32xf32>, vector<8x32xf32> -> vector<8x32xf32>
    %5 = vector.broadcast %3 : vector<1x32xf32> to vector<8x32xf32>
    %6 = arith.addf %4, %5 : vector<8x32xf32>
    %cst_7 = arith.constant 0.000000e+00 : f32
    %7 = vector.broadcast %cst_7 : f32 to vector<8x32xf32>
    %8 = arith.maximumf %6, %7 : vector<8x32xf32>
    %c32 = arith.constant 32 : index
    %c0_8 = arith.constant 0 : index
    %9 = vector.load %arg3[%c32, %c0_8] : memref<128x128xf32, #tpu.memory_space<vmem>>, vector<32x96xf32>
    %c64 = arith.constant 64 : index
    %c0_9 = arith.constant 0 : index
    %10 = vector.load %arg3[%c64, %c0_9] : memref<128x128xf32, #tpu.memory_space<vmem>>, vector<32x96xf32>
    %c1 = arith.constant 1 : index
    %c0_10 = arith.constant 0 : index
    %11 = vector.load %arg4[%c1, %c0_10] : memref<8x128xf32, #tpu.memory_space<vmem>>, vector<1x96xf32>
    %c2 = arith.constant 2 : index
    %c0_11 = arith.constant 0 : index
    %12 = vector.load %arg4[%c2, %c0_11] : memref<8x128xf32, #tpu.memory_space<vmem>>, vector<1x96xf32>
    %cst_12 = arith.constant dense<0.000000e+00> : vector<8x96xf32>
    %13 = tpu.matmul %8, %9, %cst_12 {dimension_numbers = #tpu.dot_dimension_numbers<[1], [0], [0], [1], [0, 0, 1, 1], [], []>} : vector<8x32xf32>, vector<32x96xf32>, vector<8x96xf32> -> vector<8x96xf32>
    %14 = vector.broadcast %11 : vector<1x96xf32> to vector<8x96xf32>
    %15 = arith.addf %13, %14 : vector<8x96xf32>
    %cst_13 = arith.constant dense<0.000000e+00> : vector<8x96xf32>
    %16 = tpu.matmul %1, %10, %cst_13 {dimension_numbers = #tpu.dot_dimension_numbers<[1], [0], [0], [1], [0, 0, 1, 1], [], []>} : vector<8x32xf32>, vector<32x96xf32>, vector<8x96xf32> -> vector<8x96xf32>
    %17 = vector.broadcast %12 : vector<1x96xf32> to vector<8x96xf32>
    %18 = arith.addf %16, %17 : vector<8x96xf32>
    %19 = vector.extract_strided_slice %15 {offsets = [0, 0], sizes = [8, 32], strides = [1, 1]} : vector<8x96xf32> to vector<8x32xf32>
    %20 = vector.extract_strided_slice %18 {offsets = [0, 0], sizes = [8, 32], strides = [1, 1]} : vector<8x96xf32> to vector<8x32xf32>
    %21 = arith.addf %19, %20 : vector<8x32xf32>
    %22 = arith.negf %21 : vector<8x32xf32>
    %23 = math.exp %22 : vector<8x32xf32>
    %cst_14 = arith.constant 1.000000e+00 : f32
    %24 = vector.broadcast %cst_14 : f32 to vector<8x32xf32>
    %25 = arith.addf %24, %23 : vector<8x32xf32>
    %26 = arith.divf %24, %25 : vector<8x32xf32>
    %27 = vector.extract_strided_slice %15 {offsets = [0, 32], sizes = [8, 32], strides = [1, 1]} : vector<8x96xf32> to vector<8x32xf32>
    %28 = vector.extract_strided_slice %18 {offsets = [0, 32], sizes = [8, 32], strides = [1, 1]} : vector<8x96xf32> to vector<8x32xf32>
    %29 = arith.addf %27, %28 : vector<8x32xf32>
    %30 = arith.negf %29 : vector<8x32xf32>
    %31 = math.exp %30 : vector<8x32xf32>
    %cst_15 = arith.constant 1.000000e+00 : f32
    %32 = vector.broadcast %cst_15 : f32 to vector<8x32xf32>
    %33 = arith.addf %32, %31 : vector<8x32xf32>
    %34 = arith.divf %32, %33 : vector<8x32xf32>
    %35 = vector.extract_strided_slice %15 {offsets = [0, 64], sizes = [8, 32], strides = [1, 1]} : vector<8x96xf32> to vector<8x32xf32>
    %36 = vector.extract_strided_slice %18 {offsets = [0, 64], sizes = [8, 32], strides = [1, 1]} : vector<8x96xf32> to vector<8x32xf32>
    %37 = arith.mulf %26, %36 : vector<8x32xf32>
    %38 = arith.addf %35, %37 : vector<8x32xf32>
    %39 = math.tanh %38 : vector<8x32xf32>
    %cst_16 = arith.constant 1.000000e+00 : f32
    %40 = vector.broadcast %cst_16 : f32 to vector<8x32xf32>
    %41 = arith.subf %40, %34 : vector<8x32xf32>
    %42 = arith.mulf %41, %39 : vector<8x32xf32>
    %43 = arith.mulf %34, %1 : vector<8x32xf32>
    %44 = arith.addf %42, %43 : vector<8x32xf32>
    %c96 = arith.constant 96 : index
    %c0_17 = arith.constant 0 : index
    %45 = vector.load %arg3[%c96, %c0_17] : memref<128x128xf32, #tpu.memory_space<vmem>>, vector<32x8xf32>
    %c3 = arith.constant 3 : index
    %c0_18 = arith.constant 0 : index
    %46 = vector.load %arg4[%c3, %c0_18] : memref<8x128xf32, #tpu.memory_space<vmem>>, vector<1x8xf32>
    %cst_19 = arith.constant dense<0.000000e+00> : vector<8x8xf32>
    %47 = tpu.matmul %44, %45, %cst_19 {dimension_numbers = #tpu.dot_dimension_numbers<[1], [0], [0], [1], [0, 0, 1, 1], [], []>} : vector<8x32xf32>, vector<32x8xf32>, vector<8x8xf32> -> vector<8x8xf32>
    %48 = vector.broadcast %46 : vector<1x8xf32> to vector<8x8xf32>
    %49 = arith.addf %47, %48 : vector<8x8xf32>
    %c0_20 = arith.constant 0 : index
    %c0_21 = arith.constant 0 : index
    %50 = vector.load %arg5[%c0_20, %c0_21] : memref<8x8xf32, #tpu.memory_space<vmem>>, vector<8x8xf32>
    tpu.vector_store %arg5[%c0_20, %c0_21], %49 {strides = array<i32>} : memref<8x8xf32, #tpu.memory_space<vmem>>, vector<8x8xf32>,
    %c0_22 = arith.constant 0 : index
    %c0_23 = arith.constant 0 : index
    %51 = vector.load %arg6[%c0_22, %c0_23] : memref<8x32xf32, #tpu.memory_space<vmem>>, vector<8x32xf32>
    tpu.vector_store %arg6[%c0_22, %c0_23], %44 {strides = array<i32>} : memref<8x32xf32, #tpu.memory_space<vmem>>, vector<8x32xf32>,
    return
  }
  func.func @transform_0(%arg0: i32) -> (i32, i32) {
    %c0_i32 = arith.constant 0 : i32
    %c0_i32_0 = arith.constant 0 : i32
    return %arg0, %c0_i32 : i32, i32
  }
  func.func @transform_1(%arg0: i32) -> (i32, i32) {
    %c0_i32 = arith.constant 0 : i32
    %c0_i32_0 = arith.constant 0 : i32
    return %arg0, %c0_i32 : i32, i32
  }
  func.func @transform_2(%arg0: i32) -> (i32, i32) {
    %c0_i32 = arith.constant 0 : i32
    %c0_i32_0 = arith.constant 0 : i32
    %c0_i32_1 = arith.constant 0 : i32
    return %c0_i32, %c0_i32_0 : i32, i32
  }
  func.func @transform_3(%arg0: i32) -> (i32, i32) {
    %c0_i32 = arith.constant 0 : i32
    %c0_i32_0 = arith.constant 0 : i32
    %c0_i32_1 = arith.constant 0 : i32
    return %c0_i32, %c0_i32_0 : i32, i32
  }
  func.func @transform_4(%arg0: i32) -> (i32, i32) {
    %c0_i32 = arith.constant 0 : i32
    %c0_i32_0 = arith.constant 0 : i32
    return %arg0, %c0_i32 : i32, i32
  }
  func.func @transform_5(%arg0: i32) -> (i32, i32) {
    %c0_i32 = arith.constant 0 : i32
    %c0_i32_0 = arith.constant 0 : i32
    return %arg0, %c0_i32 : i32, i32
  }
}

</mosaic_0001>

<bundles_post_ra>
// kernel: tpu_custom_call.1
= control target key start
LH: loop header
LB: loop body
LE: loop exit
PB: predicated region body
PF: predicated region fallthrough
CT: control target
= control target key end

     0   :  { %11 = vsyncpa [#allocation3], 0  ;;  %s452_s0 = inlined_call_operand.vmem [shape: f32[8,32], index: 0, kind: input, shape index: {}]   ;;  %s453_s1 = inlined_call_operand.hbm [shape: f32[8,32], index: 1, kind: input, shape index: {}, may-alias: {1,5}]   ;;  %s454_s2 = inlined_call_operand.hbm [shape: f32[128,128], index: 2, kind: input, shape index: {}]   ;;  %s455_s3 = inlined_call_operand.vmem [shape: f32[8,128], index: 3, kind: input, shape index: {}]   ;;  %s456_s4 = inlined_call_operand.hbm [shape: f32[8,8], index: 4, kind: output, shape index: {0}]   ;;  %s457_s5 = inlined_call_operand.hbm [shape: f32[8,32], index: 5, kind: output, shape index: {1}, may-alias: {1,5}]  }
   0x1   :  { %12 = vsyncpa [#allocation6], 0 }
   0x2   :  { %13 = vsyncpa [#allocation4], 0 }
   0x3   :  { %14 = vsyncpa [#allocation9], 0  ;;  %s22_s20 = sshll.u32 %s453_s1, 4  ;;  %s381_s21 = smov [#allocation2]   ;;  %s23_s20 = int_to_ptr.hbm [resolvable:$true] %s22_s20 }
   0x4   :  { %s24_s22 = sshll.u32 %s381_s21, 4  ;;  %s32_s25 = sshll.u32 %s454_s2, 4  ;;  %s25_s22 = int_to_ptr.vmem [resolvable:$true] %s24_s22  ;;  %s33_s25 = int_to_ptr.hbm [resolvable:$true] %s32_s25 }
   0x5   :  { %27 = dma.hbm_to_vmem [thread:$0]  %s23_s20, 128, %s25_s22, [#allocation3]  }
   0x6   :  { %s382_s26 = smov [#allocation5]   ;;  %s383_s28 = smov 128  }
   0x7   :  { %s34_s27 = sshll.u32 %s382_s26, 4  ;;  %s384_s29 = smov 8   ;;  %s35_s27 = int_to_ptr.vmem [resolvable:$true] %s34_s27 }
   0x8   :  { %40 = dma.hbm_to_vmem [thread:$0]  %s33_s25, 2048, %s35_s27, [#allocation6], %s383_s28, %s383_s28, %s384_s29  }
   0x9   :  { %373 = dma.done.wait [#allocation3], 128  }
   0xa   :  { %374 = vsyncadd [#allocation3], 4294967168 }
   0xb   :  { %375 = dma.done.wait [#allocation6], 2048  }
   0xc   :  { %376 = vsyncadd [#allocation6], 4294965248  ;;  %v56_v0 = vld [vmem:[#allocation5 + $0x18] sm:$0xff]  ;;  %v55_v1 = vld [vmem:[#allocation5 + $0x10] sm:$0xff]  ;;  %vm59_vm0 = vcmask 261120   ;;  %s385_s8 = smov 64  }
   0xd   :  { %75 = vmatpush.msra.mxu0 %v56_v0  ;;  %v91_v2 = vld [vmem:[#allocation5 + $0x58] sm:$0xff]  ;;  %v54_v3 = vld [vmem:[#allocation5 + $0x8] sm:$0xff]  ;;  %v90_v4 = vld [vmem:[#allocation5 + $0x50] sm:$0xff]  ;;  %s386_s11 = smov 96   ;;  %s387_s12 = smov 32   ;;  %vm215_vm5 = vcmask 64512  }
   0xe   :  { %134 = vmatpush.msra.mxu2 %v91_v2  ;;  %v89_v5 = vld [vmem:[#allocation5 + $0x48] sm:$0xff]  ;;  %v87_v6 = vld [vmem:[#allocation5 + $0x38] sm:$0xff]  ;;  %v53_v7 = vld [vmem:[#allocation5] sm:$0xff]  ;;  %s388_s13 = smov [#allocation8]   ;;  %s237_s17 = sshll.u32 %s457_s5, 4  ;;  %s238_s17 = int_to_ptr.hbm [resolvable:$true] %s237_s17 }
   0xf   :  { %76 = vmatpush.msra.mxu0 %v55_v1  ;;  %110 = vmatpush.msra.mxu1 %v87_v6  ;;  %v51_v8 = vld [vmem:[%s452_s0] sm:$0xff]  ;;  %v88_v9 = vld [vmem:[#allocation5 + $0x40] sm:$0xff]  ;;  %v86_v11 = vld [vmem:[#allocation5 + $0x30] sm:$0xff]  ;;  %s235_s14 = sshll.u32 %s388_s13, 4  ;;  %s389_s20 = smov [#allocation7]   ;;  %s236_s14 = int_to_ptr.vmem [resolvable:$true] %s235_s14 }
  0x10   :  { %135 = vmatpush.msra.mxu2 %v90_v4  ;;  %v52_v10 = vld [vmem:[#allocation2] sm:$0xff]  ;;  %v85_v12 = vld [vmem:[#allocation5 + $0x28] sm:$0xff]  ;;  %v84_v13 = vld [vmem:[#allocation5 + $0x20] sm:$0xff]  ;;  %s224_s21 = sshll.u32 %s389_s20, 4  ;;  %s226_s24 = sshll.u32 %s456_s4, 4  ;;  %s225_s21 = int_to_ptr.vmem [resolvable:$true] %s224_s21  ;;  %s227_s24 = int_to_ptr.hbm [resolvable:$true] %s226_s24 }
  0x11   :  { %77 = vmatpush.msra.mxu0 %v54_v3  ;;  %111 = vmatpush.msra.mxu1 %v86_v11  ;;  %v267_v14 = vld [vmem:[%s455_s3] ss:$0 sm:$0xff]  ;;  %v268_v18 = vld [vmem:[%s455_s3 + $0x2] ss:$0 sm:$0xff]  ;;  %v269_v21 = vld [vmem:[%s455_s3 + $0x1] ss:$0 sm:$0xff] }
  0x12   :  { %136 = vmatpush.msra.mxu2 %v89_v5  ;;  %v187_v43 = vld [vmem:[#allocation5 + $0x78] sm:$0xff]  ;;  %v186_v44 = vld [vmem:[#allocation5 + $0x70] sm:$0xff]  ;;  %v185_v45 = vld [vmem:[#allocation5 + $0x68] sm:$0xff] }
  0x13   :  { %78 = vmatpush.msra.mxu0 %v53_v7  ;;  %112 = vmatpush.msra.mxu1 %v85_v12  ;;  %v184_v46 = vld [vmem:[#allocation5 + $0x60] sm:$0xff]  ;;  %v270_v54 = vld [vmem:[%s455_s3 + $0x3] ss:$0 sm:$0xff] }
  0x14   :  { %253 = vmatmul.msk.f32.vlgmr.msra.gmra.mxu0 %vm59_vm0, %v51_v8  ;;  %137 = vmatpush.msra.mxu2 %v88_v9 }
  0x15   :  { %255 = vmatmul.msk.f32.vlgmr.msra.gmra.mxu2 %vm59_vm0, %v52_v10  ;;  %113 = vmatpush.msra.mxu1 %v84_v13 }
  0x16   :  { %207 = vmatpush.msra.mxu3 %v187_v43 }
  0x18   :  { %208 = vmatpush.msra.mxu3 %v186_v44 }
  0x1a   :  { %209 = vmatpush.msra.mxu3 %v185_v45 }
  0x1c   :  { %210 = vmatpush.msra.mxu3 %v184_v46 }
  0x91   :  { %v80_v15 = vpop.f32.mrf.mxu0 }
  0x92   :  { %v81_v16 = vadd.f32 %v267_v14, %v80_v15 }
  0x94   :  { %v83_v17 = vmax.f32 %v81_v16, 0.0 }
  0x96   :  { %254 = vmatmul.msk.f32.vlgmr.msra.gmra.mxu1 %vm59_vm0, %v83_v17 }
  0x98   :  { %v139_v19 = vpop.f32.mrf.mxu2 }
  0x99   :  { %v140_v20 = vadd.f32 %v268_v18, %v139_v19 }
  0x9b   :  { %163 = vrot.lane.b32.xlu0 %v140_v20, %s385_s8 }
 0x10d   :  { %v164_v35 = vpop.permute.xlu0 %163 }
 0x113   :  { %v115_v22 = vpop.f32.mrf.mxu1 }
 0x114   :  { %v116_v23 = vadd.f32 %v269_v21, %v115_v22 }
 0x116   :  { %v142_v24 = vadd.f32 %v140_v20, %v116_v23 }
 0x118   :  { %v256_v25 = vmul.f32 -1.442695, %v142_v24 }
 0x11a   :  { %271 = vpow2.f32 %v256_v25 }
 0x120   :  { %v272_v26 = vpop.eup %271 }
 0x121   :  { %v146_v27 = vadd.f32 1.0, %v272_v26 }
 0x123   :  { %273 = vrcp.f32 %v146_v27  ;;  %v158_v31 = vand.u32 2147483648, %v146_v27  ;;  %v156_v33 = vand.u32 2147483647, %v146_v27  ;;  %vm152_vm2 = vweird.f32 %v146_v27 }
 0x125   :  { %v159_v36 = vor.u32 1.1754944e-38, %v158_v31  ;;  %vm157_vm4 = vcmp.eq.f32.partialorder %v156_v33, 8.507059e+37 }
 0x129   :  { %v274_v28 = vpop.eup %273 }
 0x12a   :  { %v148_v29 = vmul.f32 %v274_v28, %v146_v27  ;;  %vm153_vm1 = vweird.f32 %v274_v28 }
 0x12b   :  { %vm154_vm3 = vmor %vm152_vm2, %vm153_vm1 }
 0x12c   :  { %v149_v30 = vsub.f32 1.0, %v148_v29 }
 0x12e   :  { %v150_v32 = vmul.f32 %v274_v28, %v149_v30 }
 0x130   :  { %v151_v34 = vadd.f32 %v274_v28, %v150_v32 }
 0x132   :  { %v155_v37 = vsel %vm154_vm3, %v274_v28, %v151_v34 }
 0x133   :  { %v160_v38 = vsel %vm157_vm4, %v159_v36, %v155_v37 }
 0x134   :  { %v166_v39 = vmul.f32 %v164_v35, %v160_v38  ;;  %v173_v48 = vsub.f32 1.0, %v160_v38 }
 0x136   :  { %168 = vrot.lane.b32.xlu0 %v166_v39, %s385_s8 }
 0x1a8   :  { %v169_v40 = vpop.permute.xlu0 %168 }
 0x1a9   :  { %v171_v41 = vadd.f32 %v169_v40, %v116_v23 }
 0x1ab   :  { %275 = vtanh.f32 %v171_v41 }
 0x1b1   :  { %v276_v42 = vpop.eup %275 }
 0x1b2   :  { %175 = vrot.lane.b32.xlu1 %v276_v42, %s386_s11 }
 0x1ba   :  { %179 = vrot.lane.b32.xlu1 %v52_v10, %s387_s12 }
 0x224   :  { %v176_v47 = vpop.permute.xlu1 %175 }
 0x225   :  { %v178_v50 = vmul.f32 %v176_v47, %v173_v48 }
 0x22c   :  { %v180_v49 = vpop.permute.xlu1 %179 }
 0x22d   :  { %v182_v51 = vmul.f32 %v180_v49, %v160_v38 }
 0x22f   :  { %v183_v52 = vadd.f32 %v182_v51, %v178_v50 }
 0x231   :  { %191 = vrot.lane.b32.xlu2 %v183_v52, %s386_s11 }
 0x28b   :  { %v192_v53 = vpop.permute.xlu2 %191 }
 0x28c   :  { %218 = vst.msk [vmem:[#allocation8] sm:$0xff] %vm59_vm0, %v192_v53  ;;  %257 = vmatmul.msk.f32.vlgmr.msra.gmra.mxu3 %vm59_vm0, %v192_v53 }
 0x28d   :  { %240 = dma.vmem_to_hbm [thread:$0]  %s236_s14, 128, %s238_s17, [#allocation9]  }
 0x30f   :  { %v212_v55 = vpop.f32.mrf.mxu3 }
 0x310   :  { %v213_v56 = vadd.f32 %v270_v54, %v212_v55 }
 0x312   :  { %216 = vst.msk [vmem:[#allocation7] sm:$0xff] %vm215_vm5, %v213_v56 }
 0x313   :  { %229 = dma.vmem_to_hbm [thread:$0]  %s225_s21, 128, %s227_s24, [#allocation4]  }
 0x314   :  { %377 = dma.done.wait [#allocation4], 128  }
 0x315   :  { %378 = vsyncadd [#allocation4], 4294967168 }
 0x316   :  { %379 = dma.done.wait [#allocation9], 128  }
 0x317   :  { %380 = vsyncadd [#allocation9], 4294967168 }
 0x318   :  { %249 = vsyncpa [#allocation3], 1 }
 0x319   :  { %250 = vsyncpa [#allocation6], 1 }
 0x31a   :  { %251 = vsyncpa [#allocation4], 1 }
 0x31b   :  { %252 = vsyncpa [#allocation9], 1 }

</bundles_post_ra>
